<compile_context>
chip_gen: v7x
topology: tpu7x:2x2x1
jax: 0.10.0
libtpu: 0.0.40
codegen_flags: <defaults>
</compile_context>

<pallas_src>
import numpy as np
import jax
import jax.numpy as jnp
from jax.experimental import pallas as pl
from jax.experimental.pallas import tpu as pltpu

_A = -0.75  # PyTorch's cubic-convolution constant


def _bicubic_matrix(in_size: int, out_size: int) -> np.ndarray:
    """Dense (out_size, in_size) bicubic interp matrix, align_corners=True semantics."""
    A = _A
    if out_size > 1:
        real = np.arange(out_size, dtype=np.float64) * (in_size - 1) / (out_size - 1)
    else:
        real = np.zeros((out_size,), dtype=np.float64)
    idx = np.floor(real).astype(np.int64)
    t = real - idx

    def cc1(x):  # |x| <= 1
        return ((A + 2.0) * x - (A + 3.0)) * x * x + 1.0

    def cc2(x):  # 1 < |x| < 2
        return ((A * x - 5.0 * A) * x + 8.0 * A) * x - 4.0 * A

    w = np.stack([cc2(t + 1.0), cc1(t), cc1(1.0 - t), cc2(2.0 - t)], axis=1)  # (out, 4)

    W = np.zeros((out_size, in_size), dtype=np.float64)
    rows = np.arange(out_size)
    for k in range(4):
        src = np.clip(idx - 1 + k, 0, in_size - 1)
        np.add.at(W, (rows, src), w[:, k])
    return W.astype(np.float32)


def _bicubic_kernel(wh_ref, wwt_ref, x_ref, o_ref):
    # wh_ref : (H_out, H_in)    height interp matrix (shared across the grid)
    # wwt_ref: (W_in,  W_out)   width interp matrix, pre-transposed (shared)
    # x_ref  : (bB, H_in, W_in)    batch block of input images
    # o_ref  : (bB, H_out, W_out)  batch block of output images
    bB, H_in, W_in = x_ref.shape
    W_out = wwt_ref.shape[1]

    # Width pass: fold the image batch into the matmul M dimension so the MXU
    # sees a single (bB*H_in, W_in) x (W_in, W_out) matmul per grid step.
    x2 = x_ref[...].astype(jnp.float32).reshape(bB * H_in, W_in)
    tmp = jnp.dot(x2, wwt_ref[...], preferred_element_type=jnp.float32)
    tmp = tmp.reshape(bB, H_in, W_out)                       # (bB, H_in, W_out)

    wh = wh_ref[...]                                         # (H_out, H_in)

    # Height pass: per-image (H_out, H_in) x (H_in, W_out).  bB is a small
    # static trip count, so the loop is fully unrolled at trace time
    # (equivalent to lax.fori_loop(..., unroll=True)); stores are immediate,
    # so live ranges stay short.
    for b in range(bB):
        out_b = jnp.dot(wh, tmp[b], preferred_element_type=jnp.float32)
        o_ref[b] = out_b.astype(o_ref.dtype)


def _pick_batch_block(B, H, W, H_out, W_out,
                      max_bb=64, budget_bytes=20 * 1024 * 1024):
    """Largest divisor of B (capped) whose double-buffered blocks fit a VMEM
    budget conservative enough for v7x (64 MiB physical) as well as v5e/v6e."""
    per_img = 4 * (2 * H * W            # input block, double buffered
                   + 2 * H_out * W_out  # output block, double buffered
                   + H * W_out)         # width-pass intermediate
    fixed = 4 * 2 * (H_out * H + W * W_out)   # interp matrices (double buffered)
    cap = max(1, (budget_bytes - fixed) // per_img)
    cap = int(min(cap, max_bb))
    if B >= 2:
        cap = min(cap, B // 2)          # keep >= 2 grid steps (pipelining / megacore)
    bb = 1
    for d in range(1, cap + 1):
        if B % d == 0:
            bb = d
    return bb


def bicubic_upsample_x4(x: jax.Array) -> jax.Array:
    """x: (N, C, H, W) float -> (N, C, 4H, 4W), bicubic, align_corners=True."""
    N, C, H, W = x.shape
    H_out, W_out = 4 * H, 4 * W

    wh = jnp.asarray(_bicubic_matrix(H, H_out))            # (H_out, H)
    wwt = jnp.asarray(_bicubic_matrix(W, W_out).T)         # (W, W_out), pre-transposed

    B = N * C
    xb = x.reshape(B, H, W)

    bB = _pick_batch_block(B, H, W, H_out, W_out)
    grid = (B // bB,)

    flops = 2 * B * (H * W * W_out + H * H_out * W_out)
    bytes_accessed = 4 * (B * H * W + B * H_out * W_out + H_out * H + W * W_out)
    cost = pl.CostEstimate(flops=flops, transcendentals=0,
                           bytes_accessed=bytes_accessed)

    out = pl.pallas_call(
        _bicubic_kernel,
        out_shape=jax.ShapeDtypeStruct((B, H_out, W_out), x.dtype),
        grid_spec=pltpu.PrefetchScalarGridSpec(
            num_scalar_prefetch=0,
            grid=grid,
            in_specs=[
                # Shared interp matrices: constant index_map -> DMA'd once.
                pl.BlockSpec((H_out, H), lambda b: (0, 0)),
                pl.BlockSpec((W, W_out), lambda b: (0, 0)),
                # bB images per grid step (MiB-scale DMAs).
                pl.BlockSpec((bB, H, W), lambda b: (b, 0, 0)),
            ],
            out_specs=pl.BlockSpec((bB, H_out, W_out), lambda b: (b, 0, 0)),
        ),
        compiler_params=pltpu.CompilerParams(
            dimension_semantics=("parallel",),
            vmem_limit_bytes=32 * 1024 * 1024,
        ),
        cost_estimate=cost,
    )(wh, wwt, xb)

    return out.reshape(N, C, H_out, W_out)


if __name__ == "__main__":
    key = jax.random.PRNGKey(0)
    x = jax.random.normal(key, (2, 4, 16, 16), dtype=jnp.float32)

    y = bicubic_upsample_x4(x)
    jax.block_until_ready(y)

    assert y.shape == (2, 4, 64, 64), y.shape
    assert y.dtype == x.dtype

    # Reference: same separable bicubic formulation via plain XLA einsum.
    N, C, H, W = x.shape
    wh_ref = jnp.asarray(_bicubic_matrix(H, 4 * H))
    ww_ref = jnp.asarray(_bicubic_matrix(W, 4 * W))
    ref = jnp.einsum('oh,nchw,pw->ncop', wh_ref, x, ww_ref)
    np.testing.assert_allclose(np.asarray(y), np.asarray(ref), rtol=1e-4, atol=1e-4)

    # align_corners=True reproduces corner pixels exactly.
    np.testing.assert_allclose(np.asarray(y[:, :, 0, 0]), np.asarray(x[:, :, 0, 0]),
                               rtol=1e-5, atol=1e-5)
    np.testing.assert_allclose(np.asarray(y[:, :, -1, -1]), np.asarray(x[:, :, -1, -1]),
                               rtol=1e-5, atol=1e-5)

    print("KERNEL_OK")
</pallas_src>

<mosaic_0001>
module attributes {stable_mosaic.version = 11 : i64} {
  func.func @_bicubic_kernel(%arg0: i32, %arg1: memref<64x16xf32, #tpu.memory_space<vmem>>, %arg2: memref<16x64xf32, #tpu.memory_space<vmem>>, %arg3: memref<4x16x16xf32, #tpu.memory_space<vmem>>, %arg4: memref<4x64x64xf32, #tpu.memory_space<vmem>>) attributes {dimension_semantics = [#tpu.dimension_semantics<parallel>], iteration_bounds = array<i64: 2>, scalar_prefetch = 0 : i64, scratch_operands = 0 : i64, tpu.core_type = #tpu.core_type<tc>, window_params = [{pipeline_mode = #tpu.pipeline_mode<synchronous>, transform_indices = @transform_0, window_bounds = array<i64: 64, 16>}, {pipeline_mode = #tpu.pipeline_mode<synchronous>, transform_indices = @transform_1, window_bounds = array<i64: 16, 64>}, {transform_indices = @transform_2, window_bounds = array<i64: 4, 16, 16>}, {transform_indices = @transform_3, window_bounds = array<i64: 4, 64, 64>}]} {
    %c0 = arith.constant 0 : index
    %c0_0 = arith.constant 0 : index
    %c0_1 = arith.constant 0 : index
    %0 = vector.load %arg3[%c0, %c0_0, %c0_1] : memref<4x16x16xf32, #tpu.memory_space<vmem>>, vector<4x16x16xf32>
    %1 = vector.shape_cast %0 : vector<4x16x16xf32> to vector<64x16xf32>
    %c0_2 = arith.constant 0 : index
    %c0_3 = arith.constant 0 : index
    %2 = vector.load %arg2[%c0_2, %c0_3] : memref<16x64xf32, #tpu.memory_space<vmem>>, vector<16x64xf32>
    %cst = arith.constant dense<0.000000e+00> : vector<64x64xf32>
    %3 = tpu.matmul %1, %2, %cst {dimension_numbers = #tpu.dot_dimension_numbers<[1], [0], [0], [1], [0, 0, 1, 1], [], []>} : vector<64x16xf32>, vector<16x64xf32>, vector<64x64xf32> -> vector<64x64xf32>
    %4 = vector.shape_cast %3 : vector<64x64xf32> to vector<4x16x64xf32>
    %c0_4 = arith.constant 0 : index
    %c0_5 = arith.constant 0 : index
    %5 = vector.load %arg1[%c0_4, %c0_5] : memref<64x16xf32, #tpu.memory_space<vmem>>, vector<64x16xf32>
    %6 = vector.extract_strided_slice %4 {offsets = [0, 0, 0], sizes = [1, 16, 64], strides = [1, 1, 1]} : vector<4x16x64xf32> to vector<1x16x64xf32>
    %7 = vector.shape_cast %6 : vector<1x16x64xf32> to vector<16x64xf32>
    %cst_6 = arith.constant dense<0.000000e+00> : vector<64x64xf32>
    %8 = tpu.matmul %5, %7, %cst_6 {dimension_numbers = #tpu.dot_dimension_numbers<[1], [0], [0], [1], [0, 0, 1, 1], [], []>} : vector<64x16xf32>, vector<16x64xf32>, vector<64x64xf32> -> vector<64x64xf32>
    %c0_7 = arith.constant 0 : index
    %c0_8 = arith.constant 0 : index
    %c0_9 = arith.constant 0 : index
    %9 = vector.load %arg4[%c0_7, %c0_8, %c0_9] : memref<4x64x64xf32, #tpu.memory_space<vmem>>, vector<1x64x64xf32>
    %10 = vector.shape_cast %9 : vector<1x64x64xf32> to vector<64x64xf32>
    %11 = vector.shape_cast %8 : vector<64x64xf32> to vector<1x64x64xf32>
    tpu.vector_store %arg4[%c0_7, %c0_8, %c0_9], %11 {strides = array<i32>} : memref<4x64x64xf32, #tpu.memory_space<vmem>>, vector<1x64x64xf32>,
    %12 = vector.extract_strided_slice %4 {offsets = [1, 0, 0], sizes = [1, 16, 64], strides = [1, 1, 1]} : vector<4x16x64xf32> to vector<1x16x64xf32>
    %13 = vector.shape_cast %12 : vector<1x16x64xf32> to vector<16x64xf32>
    %cst_10 = arith.constant dense<0.000000e+00> : vector<64x64xf32>
    %14 = tpu.matmul %5, %13, %cst_10 {dimension_numbers = #tpu.dot_dimension_numbers<[1], [0], [0], [1], [0, 0, 1, 1], [], []>} : vector<64x16xf32>, vector<16x64xf32>, vector<64x64xf32> -> vector<64x64xf32>
    %c1 = arith.constant 1 : index
    %c0_11 = arith.constant 0 : index
    %c0_12 = arith.constant 0 : index
    %15 = vector.load %arg4[%c1, %c0_11, %c0_12] : memref<4x64x64xf32, #tpu.memory_space<vmem>>, vector<1x64x64xf32>
    %16 = vector.shape_cast %15 : vector<1x64x64xf32> to vector<64x64xf32>
    %17 = vector.shape_cast %14 : vector<64x64xf32> to vector<1x64x64xf32>
    tpu.vector_store %arg4[%c1, %c0_11, %c0_12], %17 {strides = array<i32>} : memref<4x64x64xf32, #tpu.memory_space<vmem>>, vector<1x64x64xf32>,
    %18 = vector.extract_strided_slice %4 {offsets = [2, 0, 0], sizes = [1, 16, 64], strides = [1, 1, 1]} : vector<4x16x64xf32> to vector<1x16x64xf32>
    %19 = vector.shape_cast %18 : vector<1x16x64xf32> to vector<16x64xf32>
    %cst_13 = arith.constant dense<0.000000e+00> : vector<64x64xf32>
    %20 = tpu.matmul %5, %19, %cst_13 {dimension_numbers = #tpu.dot_dimension_numbers<[1], [0], [0], [1], [0, 0, 1, 1], [], []>} : vector<64x16xf32>, vector<16x64xf32>, vector<64x64xf32> -> vector<64x64xf32>
    %c2 = arith.constant 2 : index
    %c0_14 = arith.constant 0 : index
    %c0_15 = arith.constant 0 : index
    %21 = vector.load %arg4[%c2, %c0_14, %c0_15] : memref<4x64x64xf32, #tpu.memory_space<vmem>>, vector<1x64x64xf32>
    %22 = vector.shape_cast %21 : vector<1x64x64xf32> to vector<64x64xf32>
    %23 = vector.shape_cast %20 : vector<64x64xf32> to vector<1x64x64xf32>
    tpu.vector_store %arg4[%c2, %c0_14, %c0_15], %23 {strides = array<i32>} : memref<4x64x64xf32, #tpu.memory_space<vmem>>, vector<1x64x64xf32>,
    %24 = vector.extract_strided_slice %4 {offsets = [3, 0, 0], sizes = [1, 16, 64], strides = [1, 1, 1]} : vector<4x16x64xf32> to vector<1x16x64xf32>
    %25 = vector.shape_cast %24 : vector<1x16x64xf32> to vector<16x64xf32>
    %cst_16 = arith.constant dense<0.000000e+00> : vector<64x64xf32>
    %26 = tpu.matmul %5, %25, %cst_16 {dimension_numbers = #tpu.dot_dimension_numbers<[1], [0], [0], [1], [0, 0, 1, 1], [], []>} : vector<64x16xf32>, vector<16x64xf32>, vector<64x64xf32> -> vector<64x64xf32>
    %c3 = arith.constant 3 : index
    %c0_17 = arith.constant 0 : index
    %c0_18 = arith.constant 0 : index
    %27 = vector.load %arg4[%c3, %c0_17, %c0_18] : memref<4x64x64xf32, #tpu.memory_space<vmem>>, vector<1x64x64xf32>
    %28 = vector.shape_cast %27 : vector<1x64x64xf32> to vector<64x64xf32>
    %29 = vector.shape_cast %26 : vector<64x64xf32> to vector<1x64x64xf32>
    tpu.vector_store %arg4[%c3, %c0_17, %c0_18], %29 {strides = array<i32>} : memref<4x64x64xf32, #tpu.memory_space<vmem>>, vector<1x64x64xf32>,
    return
  }
  func.func @transform_0(%arg0: i32) -> (i32, i32) {
    %c0_i32 = arith.constant 0 : i32
    %c0_i32_0 = arith.constant 0 : i32
    %c0_i32_1 = arith.constant 0 : i32
    return %c0_i32, %c0_i32_0 : i32, i32
  }
  func.func @transform_1(%arg0: i32) -> (i32, i32) {
    %c0_i32 = arith.constant 0 : i32
    %c0_i32_0 = arith.constant 0 : i32
    %c0_i32_1 = arith.constant 0 : i32
    return %c0_i32, %c0_i32_0 : i32, i32
  }
  func.func @transform_2(%arg0: i32) -> (i32, i32, i32) {
    %c0_i32 = arith.constant 0 : i32
    %c0_i32_0 = arith.constant 0 : i32
    %c0_i32_1 = arith.constant 0 : i32
    return %arg0, %c0_i32, %c0_i32_0 : i32, i32, i32
  }
  func.func @transform_3(%arg0: i32) -> (i32, i32, i32) {
    %c0_i32 = arith.constant 0 : i32
    %c0_i32_0 = arith.constant 0 : i32
    %c0_i32_1 = arith.constant 0 : i32
    return %arg0, %c0_i32, %c0_i32_0 : i32, i32, i32
  }
}

</mosaic_0001>

<bundles_post_ra>
// kernel: tpu_custom_call.1
= control target key start
LH: loop header
LB: loop body
LE: loop exit
PB: predicated region body
PF: predicated region fallthrough
CT: control target
= control target key end

     0   :  { %8 = vsyncpa [#allocation3], 0  ;;  %s1618_s0 = inlined_call_operand.vmem [shape: f32[64,16], index: 0, kind: input, shape index: {}]   ;;  %s1619_s1 = inlined_call_operand.vmem [shape: f32[16,64], index: 1, kind: input, shape index: {}]   ;;  %s1620_s2 = inlined_call_operand.hbm [shape: f32[8,16,16], index: 2, kind: input, shape index: {}]   ;;  %s1621_s3 = inlined_call_operand.hbm [shape: f32[8,64,64], index: 3, kind: output, shape index: {}]  }
   0x1   :  { %10 = vsyncpa [#allocation3 + $0x1], 0 }
   0x2   :  { %11 = vsyncpa [#allocation4], 0 }
   0x3   :  { %13 = vsyncpa [#allocation4 + $0x1], 0  ;;  %s1318_s12 = smov 0   ;;  %s1320_s13 = smov 0  }
   0x4   :  { %s1322_s14 = smov 0   ;;  %s1324_s15 = smov 0  }
   0x5 LB: > { %s1339_s16 = sadd.s32 4294967295, %s1290_s15   ;;  %s908_s17 = sadd.s32 4294967294, %s1290_s15   ;;  %s1290_s15 = sphi %s1324_s15, %s1634_s15   ;;  %s1286_s14 = sphi %s1322_s14, %s1633_s14   ;;  %s1282_s13 = sphi %s1320_s13, %s1632_s13   ;;  %s1278_s12 = sphi %s1318_s12, %s1631_s12  }
   0x6   : > { %s1343_s18 = sadd.s32 1, %s1290_s15   ;;  %s68_s19 = sadd.s32 1, %s1286_s14 }
   0x7   : > { %s65_s20 = ssub.s32 %s1290_s15, %s1343_s18  ;;  %p75_p0 = scmp.ne.s32.totalorder %s1286_s14, %s1282_s13 }
   0x8   : > { %p66_p1 = scmp.eq.s32.totalorder %s65_s20, 0  ;;  %p76_p2 = scmp.eq.s32.totalorder %s1290_s15, 0 }
   0x9   : > { %p81_p3 = scmp.ne.s32.totalorder %s1282_s13, %s1278_s12  ;;  %p82_p4 = scmp.eq.s32.totalorder %s1339_s16, 0 }
   0xa   : > { %s1355_s21 = scalar_select %p66_p1, %s1286_s14, %s68_s19  }
   0xb   : > { %p1357_p5 = por %p76_p2, %p75_p0  ;;  %p1361_p6 = por %p82_p4, %p81_p3 }
   0xc   : > { %p105_p7 = scmp.eq.s32.totalorder %s1339_s16, 1  ;;  %p111_p8 = scmp.eq.s32.totalorder %s908_s17, 1 }
   0xd   : > { %p1156_p10 = scmp.lt.s32.totalorder %s1290_s15, 2  ;;  %s137_s26 = sand.u32 1, %s1286_s14  }
   0xe   : > { %p1368_p11 = por %p105_p7, %p75_p0  ;;  %p1372_p12 = por %p111_p8, %p81_p3 }
   0xf   : > { %s989_s27 = sshll.u32 %s1290_s15, 10  ;;  %s911_s28 = sshll.u32 %s137_s26, 6 }
  0x10   : > { %s1625_s24 = scalar_select %p1368_p11, 1, 0 }
  0x11   : > { %s1626_s25 = scalar_select %p1372_p12, 1, 0 }
  0x12   : > { %s1381_s4 = scalar_lea.hbm %s1620_s2, %s989_s27  ;;  %s141_s5 = scalar_lea.vmem [#allocation2], %s911_s28 }
  0x13   : > { %s149_s6 = sshll.u32 %s141_s5, 4  ;;  %p1385_p13 = pnand %p1156_p10, %p1357_p5  ;;  %s1389_s6 = int_to_ptr.vmem [resolvable:$true] %s149_s6 }
  0x14   : > { %s1391_s8 = scalar_lea.sflag [#allocation3], %s137_s26  ;;  %s1194_s9 = scalar_lea.hbm %s1381_s4, 1024 }
  0x15   : > { %p1195_p0 = scmp.ne.s32.totalorder %s1381_s4, %s1194_s9  ;;  %p1196_p1 = pneg %p1385_p13 }
  0x16   : > { %s1199_s17 = scalar_lea.hbm %s1620_s2, 2048  ;;  %p1200_p4 = scmp.lt.u32.totalorder %s1381_s4, %s1620_s2 }
  0x17   : > { %p1197_p2 = pnand %p1196_p1, %p1195_p0  ;;  %p1201_p5 = scmp.lt.u32.totalorder %s1199_s17, %s1194_s9 }
  0x18   : > { %p1203_p8 = scmp.lt.u32.totalorder %s1194_s9, %s1381_s4 }
  0x19   : > { %p1198_p3 = pneg %p1197_p2  ;;  %p1202_p7 = por %p1201_p5, %p1200_p4 }
  0x1b   : > { %p1204_p10 = por %p1203_p8, %p1202_p7 }
  0x1d   : > { %p1205_p9 = pnand %p1204_p10, %p1198_p3 }
  0x1f   : > { %1208 = shalt.err (!%p1205_p9)
}
  0x20   : > { %s1209_s22 = scalar_lea.vmem %s1389_s6, 1024  ;;  %s1292_s26 = smov [#allocation2]  }
  0x21   : > { %p1210_p0 = scmp.ne.s32.totalorder %s1389_s6, %s1209_s22  ;;  %s1214_s27 = sshll.u32 %s1292_s26, 4  ;;  %s1215_s27 = int_to_ptr.vmem [resolvable:$false] %s1214_s27 }
  0x22   : > { %s1216_s28 = scalar_lea.vmem %s1215_s27, 2048  ;;  %p1217_p11 = scmp.lt.s32.totalorder %s1389_s6, %s1215_s27 }
  0x23   : > { %p1212_p2 = pnand %p1210_p0, %p1196_p1  ;;  %p1218_p4 = scmp.lt.s32.totalorder %s1216_s28, %s1209_s22 }
  0x25   : > { %p1213_p12 = pneg %p1212_p2  ;;  %p1219_p5 = por %p1218_p4, %p1217_p11 }
  0x27   : > { %p1220_p7 = pnand %p1219_p5, %p1213_p12 }
  0x29   : > { %1223 = shalt.err (!%p1220_p7)
}
  0x2a   : > { %s1293_s29 = smov 128   ;;  %s1294_s30 = smov 8  }
  0x2b   : > { %1151 = dma.hbm_to_vmem [thread:$0]  (!%p1385_p13), %s1381_s4, 1024, %s1389_s6, %s1391_s8, %s1293_s29, %s1293_s29, %s1294_s30  }
  0x2c   : > { %p915_p9 = scmp.ge.s32.totalorder %s1290_s15, 1  ;;  %p157_p1 = scmp.lt.s32.totalorder %s1290_s15, 3 }
  0x2e   : > { %p158_p3 = pnand %p915_p9, %p157_p1 }
  0x2f   : > { %s1422_s5 = sand.u32 (!%p158_p3), 1, %s1282_s13  }
  0x30   : > { %161 = sbr.rel (%p158_p3) target bundleno = 542 (0x21e), region = 32  ;;  %s916_s9 = sshll.u32 (!%p158_p3), %s1422_s5, 6 }
  0x31   : > { %s164_s10 = scalar_lea.sflag (!%p158_p3), [#allocation3], %s1422_s5  ;;  %s167_s11 = scalar_lea.vmem (!%p158_p3), [#allocation2], %s916_s9 }
  0x37   : > { %1269 = dma.done.wait (%p1361_p6), %s164_s10, 1024  }
  0x38   : > { %1271 = vsyncadd (%p1361_p6), %s164_s10, 4294966272  ;;  %vm202_vm0 = vcmask 130048   ;;  %v200_v0 = vld [vmem:[%s1619_s1] sm:$0xff]  ;;  %v201_v1 = vld [vmem:[%s1619_s1 + $0x8] sm:$0xff]  ;;  %s917_s8 = sshll.u32 %s1422_s5, 8  ;;  %vm469_vm1 = vcmask 523264  }
  0x39   : > { %v192_v2 = vld [vmem:[%s167_s11] sm:$0xff]  ;;  %v1122_v3 = vpack.c.bf16 %v201_v1, %v200_v0  ;;  %v193_v5 = vld [vmem:[%s167_s11 + $0x8] sm:$0xff]  ;;  %v194_v7 = vld [vmem:[%s167_s11 + $0x10] sm:$0xff]  ;;  %s1501_s23 = scalar_lea.vmem [#allocation5], %s917_s8  ;;  %s991_s17 = sshll.u32 %s1339_s16, 12 }
  0x3a   : > { %1046 = vmatprep.mubr.msk.f32.mxu0 %vm202_vm0, %v192_v2  ;;  %v196_v4 = vld [vmem:[%s167_s11 + $0x20] sm:$0xff]  ;;  %v197_v6 = vld [vmem:[%s167_s11 + $0x28] sm:$0xff]  ;;  %v198_v8 = vld [vmem:[%s167_s11 + $0x30] sm:$0xff]  ;;  %s835_s19 = sshll.u32 %s1501_s23, 4  ;;  %s1568_s26 = scalar_lea.hbm %s1621_s3, %s991_s17  ;;  %s1570_s19 = int_to_ptr.vmem [resolvable:$true] %s835_s19 }
  0x3b   : > { %1123 = vmatprep.subr.bf16.mxu0 %v1122_v3  ;;  %1142 = vmatprep.subr.bf16.mxu1 %v1122_v3  ;;  %v195_v9 = vld [vmem:[%s167_s11 + $0x18] sm:$0xff]  ;;  %v332_v11 = vld [vmem:[%s1618_s0] sm:$0xff]  ;;  %v333_v22 = vld [vmem:[%s1618_s0 + $0x8] sm:$0xff]  ;;  %s821_s16 = scalar_lea.sflag [#allocation4], %s1422_s5  ;;  %s1224_s27 = scalar_lea.vmem %s1570_s19, 4096 }
  0x3c   : > { %1125 = vmatpush3.bf16.msra.mxu0 %v1122_v3  ;;  %1143 = vmatpush3.bf16.msra.mxu1 %v1122_v3  ;;  %v199_v10 = vld [vmem:[%s167_s11 + $0x38] sm:$0xff]  ;;  %v334_v25 = vld [vmem:[%s1618_s0 + $0x10] sm:$0xff]  ;;  %v336_v27 = vld [vmem:[%s1618_s0 + $0x20] sm:$0xff]  ;;  %p1225_p6 = scmp.ne.s32.totalorder %s1570_s19, %s1224_s27  ;;  %p1628_p11 = scmp.ne.s32.totalorder %s1625_s24, 0 }
  0x3d   : > { %1052 = vmatprep.mubr.msk.f32.mxu1 %vm202_vm0, %v196_v4  ;;  %v335_v26 = vld [vmem:[%s1618_s0 + $0x18] sm:$0xff]  ;;  %v337_v28 = vld [vmem:[%s1618_s0 + $0x28] sm:$0xff]  ;;  %v338_v29 = vld [vmem:[%s1618_s0 + $0x30] sm:$0xff]  ;;  %s1295_s28 = smov [#allocation5]  }
  0x3e   : > { %v339_v30 = vld [vmem:[%s1618_s0 + $0x38] sm:$0xff]  ;;  %p1226_p12 = pnand %p1225_p6, %p1628_p11  ;;  %s1228_s29 = sshll.u32 %s1295_s28, 4  ;;  %s1229_s29 = int_to_ptr.vmem [resolvable:$false] %s1228_s29 }
  0x3f   : > { %1047 = vmatmul.mubr.msk.f32.vlgmr.msra.gmra.mrb[0].mxu0 %vm202_vm0, %v193_v5  ;;  %1053 = vmatmul.mubr.msk.f32.vlgmr.msra.gmra.mrb[0].mxu1 %vm202_vm0, %v197_v6  ;;  %s1230_s30 = scalar_lea.vmem %s1229_s29, 8192  ;;  %p1231_p8 = scmp.lt.s32.totalorder %s1570_s19, %s1229_s29 }
  0x40   : > { %1049 = vmatprep.mubr.msk.f32.mxu0 %vm202_vm0, %v194_v7  ;;  %1055 = vmatprep.mubr.msk.f32.mxu1 %vm202_vm0, %v198_v8  ;;  %p1227_p13 = pneg %p1226_p12  ;;  %p1232_p10 = scmp.lt.s32.totalorder %s1230_s30, %s1224_s27 }
  0x42   : > { %p1233_p0 = por %p1232_p10, %p1231_p8 }
  0x43   : > { %1050 = vmatmul.mubr.msk.f32.gmra.mrb[2].mxu0 %vm202_vm0, %v195_v9  ;;  %1056 = vmatmul.mubr.msk.f32.gmra.mrb[2].mxu1 %vm202_vm0, %v199_v10 }
  0x44   : > { %1062 = vmatprep.mubr.msk.f32.mxu1 %vm202_vm0, %v332_v11  ;;  %1078 = vmatprep.mubr.msk.f32.mxu0 %vm202_vm0, %v332_v11  ;;  %p1234_p2 = pnand %p1233_p0, %p1227_p13 }
 0x112   : > { %v1048_v12 = vpop.f32.mrb[0].mxu0  ;;  %v1054_v13 = vpop.f32.mrb[0].mxu1 }
 0x113   : > { %v293_v14 = vpop.f32.mrb[1].mxu0  ;;  %v313_v15 = vpop.f32.mrb[1].mxu1 }
 0x114   : > { %v1126_v16 = vpack.c.bf16 %v1048_v12, %v293_v14  ;;  %v1134_v17 = vpack.c.bf16 %v1054_v13, %v313_v15 }
 0x116   : > { %v1051_v18 = vpop.f32.mrb[2].mxu0  ;;  %1127 = vmatprep.subr.bf16.mxu1 %v1126_v16  ;;  %v1057_v19 = vpop.f32.mrb[2].mxu1 }
 0x117   : > { %v303_v20 = vpop.f32.mrb[3].mxu0  ;;  %1129 = vmatpush3.bf16.msra.mxu1 %v1126_v16  ;;  %v323_v21 = vpop.f32.mrb[3].mxu1 }
 0x118   : > { %v1130_v23 = vpack.c.bf16 %v1051_v18, %v303_v20  ;;  %1135 = vmatprep.subr.bf16.mxu1 %v1134_v17  ;;  %v1138_v24 = vpack.c.bf16 %v1057_v19, %v323_v21 }
 0x11a   : > { %1131 = vmatprep.subr.bf16.mxu0 %v1130_v23  ;;  %1063 = vmatmul.mubr.msk.f32.vlgmr.msra.gmra.mrb[4].mxu1 %vm202_vm0, %v333_v22 }
 0x11b   : > { %1133 = vmatpush3.bf16.msra.mxu0 %v1130_v23  ;;  %1137 = vmatpush3.bf16.msra.mxu1 %v1134_v17 }
 0x11c   : > { %1139 = vmatprep.subr.bf16.mxu0 %v1138_v24  ;;  %1065 = vmatprep.mubr.msk.f32.mxu1 %vm202_vm0, %v334_v25 }
 0x11e   : > { %1079 = vmatmul.mubr.msk.f32.vlgmr.msra.gmra.mrb[4].mxu0 %vm202_vm0, %v333_v22  ;;  %1066 = vmatmul.mubr.msk.f32.gmra.mrb[6].mxu1 %vm202_vm0, %v335_v26 }
 0x11f   : > { %1141 = vmatpush3.bf16.msra.mxu0 %v1138_v24  ;;  %1081 = vmatprep.mubr.msk.f32.mxu0 %vm202_vm0, %v334_v25 }
 0x120   : > { %1068 = vmatprep.mubr.msk.f32.mxu1 %vm202_vm0, %v336_v27 }
 0x122   : > { %1082 = vmatmul.mubr.msk.f32.gmra.mrb[6].mxu0 %vm202_vm0, %v335_v26  ;;  %1069 = vmatmul.mubr.msk.f32.gmra.mrb[8].mxu1 %vm202_vm0, %v337_v28 }
 0x123   : > { %1084 = vmatprep.mubr.msk.f32.mxu0 %vm202_vm0, %v336_v27  ;;  %1071 = vmatprep.mubr.msk.f32.mxu1 %vm202_vm0, %v338_v29 }
 0x126   : > { %1085 = vmatmul.mubr.msk.f32.gmra.mrb[8].mxu0 %vm202_vm0, %v337_v28  ;;  %1072 = vmatmul.mubr.msk.f32.gmra.mrb[10].mxu1 %vm202_vm0, %v339_v30 }
 0x127   : > { %1087 = vmatprep.mubr.msk.f32.mxu0 %vm202_vm0, %v338_v29  ;;  %1094 = vmatprep.mubr.msk.f32.mxu1 %vm202_vm0, %v332_v11 }
 0x12a   : > { %1088 = vmatmul.mubr.msk.f32.gmra.mrb[10].mxu0 %vm202_vm0, %v339_v30  ;;  %1095 = vmatmul.mubr.msk.f32.vlgmr.msra.gmra.mrb[12].mxu1 %vm202_vm0, %v333_v22 }
 0x12b   : > { %1110 = vmatprep.mubr.msk.f32.mxu0 %vm202_vm0, %v332_v11  ;;  %1097 = vmatprep.mubr.msk.f32.mxu1 %vm202_vm0, %v334_v25 }
 0x12e   : > { %1111 = vmatmul.mubr.msk.f32.vlgmr.msra.gmra.mrb[12].mxu0 %vm202_vm0, %v333_v22  ;;  %1098 = vmatmul.mubr.msk.f32.gmra.mrb[14].mxu1 %vm202_vm0, %v335_v26 }
 0x12f   : > { %1113 = vmatprep.mubr.msk.f32.mxu0 %vm202_vm0, %v334_v25  ;;  %1100 = vmatprep.mubr.msk.f32.mxu1 %vm202_vm0, %v336_v27 }
 0x132   : > { %1114 = vmatmul.mubr.msk.f32.gmra.mrb[14].mxu0 %vm202_vm0, %v335_v26  ;;  %1101 = vmatmul.mubr.msk.f32.gmra.mrb[16].mxu1 %vm202_vm0, %v337_v28 }
 0x133   : > { %1116 = vmatprep.mubr.msk.f32.mxu0 %vm202_vm0, %v336_v27  ;;  %1103 = vmatprep.mubr.msk.f32.mxu1 %vm202_vm0, %v338_v29 }
 0x136   : > { %1117 = vmatmul.mubr.msk.f32.gmra.mrb[16].mxu0 %vm202_vm0, %v337_v28  ;;  %1104 = vmatmul.mubr.msk.f32.gmra.mrb[18].mxu1 %vm202_vm0, %v339_v30 }
 0x137   : > { %1119 = vmatprep.mubr.msk.f32.mxu0 %vm202_vm0, %v338_v29 }
 0x13a   : > { %1120 = vmatmul.mubr.msk.f32.gmra.mrb[18].mxu0 %vm202_vm0, %v339_v30 }
 0x1ed   : > { %v1064_v31 = vpop.f32.mrb[4].mxu1 }
 0x1ee   : > { %471 = vst.msk [vmem:[%s1501_s23 + $0x8] sm:$0xff] %vm469_vm1, %v1064_v31  ;;  %v430_v32 = vpop.f32.mrb[5].mxu1 }
 0x1ef   : > { %470 = vst.msk [vmem:[%s1501_s23] sm:$0xff] %vm469_vm1, %v430_v32 }
 0x1f1   : > { %v1080_v33 = vpop.f32.mrb[4].mxu0  ;;  %v1067_v34 = vpop.f32.mrb[6].mxu1 }
 0x1f2   : > { %943 = vst.msk [vmem:[%s1501_s23 + $0x48] sm:$0xff] %vm469_vm1, %v1080_v33  ;;  %v544_v35 = vpop.f32.mrb[5].mxu0  ;;  %473 = vst.msk [vmem:[%s1501_s23 + $0x18] sm:$0xff] %vm469_vm1, %v1067_v34  ;;  %v440_v36 = vpop.f32.mrb[7].mxu1 }
 0x1f3   : > { %942 = vst.msk [vmem:[%s1501_s23 + $0x40] sm:$0xff] %vm469_vm1, %v544_v35  ;;  %472 = vst.msk [vmem:[%s1501_s23 + $0x10] sm:$0xff] %vm469_vm1, %v440_v36 }
 0x1f5   : > { %v1083_v37 = vpop.f32.mrb[6].mxu0  ;;  %v1070_v38 = vpop.f32.mrb[8].mxu1 }
 0x1f6   : > { %945 = vst.msk [vmem:[%s1501_s23 + $0x58] sm:$0xff] %vm469_vm1, %v1083_v37  ;;  %v554_v39 = vpop.f32.mrb[7].mxu0  ;;  %475 = vst.msk [vmem:[%s1501_s23 + $0x28] sm:$0xff] %vm469_vm1, %v1070_v38  ;;  %v450_v40 = vpop.f32.mrb[9].mxu1 }
 0x1f7   : > { %944 = vst.msk [vmem:[%s1501_s23 + $0x50] sm:$0xff] %vm469_vm1, %v554_v39  ;;  %474 = vst.msk [vmem:[%s1501_s23 + $0x20] sm:$0xff] %vm469_vm1, %v450_v40 }
 0x1f9   : > { %v1086_v41 = vpop.f32.mrb[8].mxu0  ;;  %v1073_v42 = vpop.f32.mrb[10].mxu1 }
 0x1fa   : > { %947 = vst.msk [vmem:[%s1501_s23 + $0x68] sm:$0xff] %vm469_vm1, %v1086_v41  ;;  %v564_v43 = vpop.f32.mrb[9].mxu0  ;;  %477 = vst.msk [vmem:[%s1501_s23 + $0x38] sm:$0xff] %vm469_vm1, %v1073_v42  ;;  %v460_v44 = vpop.f32.mrb[11].mxu1 }
 0x1fb   : > { %946 = vst.msk [vmem:[%s1501_s23 + $0x60] sm:$0xff] %vm469_vm1, %v564_v43  ;;  %476 = vst.msk [vmem:[%s1501_s23 + $0x30] sm:$0xff] %vm469_vm1, %v460_v44 }
 0x1fd   : > { %v1089_v45 = vpop.f32.mrb[10].mxu0  ;;  %v1096_v46 = vpop.f32.mrb[12].mxu1 }
 0x1fe   : > { %949 = vst.msk [vmem:[%s1501_s23 + $0x78] sm:$0xff] %vm469_vm1, %v1089_v45  ;;  %v574_v47 = vpop.f32.mrb[11].mxu0  ;;  %959 = vst.msk [vmem:[%s1501_s23 + $0x88] sm:$0xff] %vm469_vm1, %v1096_v46  ;;  %v658_v48 = vpop.f32.mrb[13].mxu1 }
 0x1ff   : > { %948 = vst.msk [vmem:[%s1501_s23 + $0x70] sm:$0xff] %vm469_vm1, %v574_v47  ;;  %958 = vst.msk [vmem:[%s1501_s23 + $0x80] sm:$0xff] %vm469_vm1, %v658_v48 }
 0x201   : > { %v1112_v49 = vpop.f32.mrb[12].mxu0  ;;  %v1099_v50 = vpop.f32.mrb[14].mxu1 }
 0x202   : > { %975 = vst.msk [vmem:[%s1501_s23 + $0xc8] sm:$0xff] %vm469_vm1, %v1112_v49  ;;  %v772_v51 = vpop.f32.mrb[13].mxu0  ;;  %961 = vst.msk [vmem:[%s1501_s23 + $0x98] sm:$0xff] %vm469_vm1, %v1099_v50  ;;  %v668_v52 = vpop.f32.mrb[15].mxu1 }
 0x203   : > { %974 = vst.msk [vmem:[%s1501_s23 + $0xc0] sm:$0xff] %vm469_vm1, %v772_v51  ;;  %960 = vst.msk [vmem:[%s1501_s23 + $0x90] sm:$0xff] %vm469_vm1, %v668_v52 }
 0x205   : > { %v1115_v53 = vpop.f32.mrb[14].mxu0  ;;  %v1102_v54 = vpop.f32.mrb[16].mxu1 }
 0x206   : > { %977 = vst.msk [vmem:[%s1501_s23 + $0xd8] sm:$0xff] %vm469_vm1, %v1115_v53  ;;  %v782_v55 = vpop.f32.mrb[15].mxu0  ;;  %963 = vst.msk [vmem:[%s1501_s23 + $0xa8] sm:$0xff] %vm469_vm1, %v1102_v54  ;;  %v678_v56 = vpop.f32.mrb[17].mxu1 }
 0x207   : > { %976 = vst.msk [vmem:[%s1501_s23 + $0xd0] sm:$0xff] %vm469_vm1, %v782_v55  ;;  %962 = vst.msk [vmem:[%s1501_s23 + $0xa0] sm:$0xff] %vm469_vm1, %v678_v56 }
 0x209   : > { %v1118_v57 = vpop.f32.mrb[16].mxu0  ;;  %v1105_v58 = vpop.f32.mrb[18].mxu1 }
 0x20a   : > { %979 = vst.msk [vmem:[%s1501_s23 + $0xe8] sm:$0xff] %vm469_vm1, %v1118_v57  ;;  %v792_v59 = vpop.f32.mrb[17].mxu0  ;;  %965 = vst.msk [vmem:[%s1501_s23 + $0xb8] sm:$0xff] %vm469_vm1, %v1105_v58  ;;  %v688_v60 = vpop.f32.mrb[19].mxu1 }
 0x20b   : > { %978 = vst.msk [vmem:[%s1501_s23 + $0xe0] sm:$0xff] %vm469_vm1, %v792_v59  ;;  %964 = vst.msk [vmem:[%s1501_s23 + $0xb0] sm:$0xff] %vm469_vm1, %v688_v60 }
 0x20d   : > { %v1121_v61 = vpop.f32.mrb[18].mxu0 }
 0x20e   : > { %981 = vst.msk [vmem:[%s1501_s23 + $0xf8] sm:$0xff] %vm469_vm1, %v1121_v61  ;;  %v802_v62 = vpop.f32.mrb[19].mxu0 }
 0x20f   : > { %980 = vst.msk [vmem:[%s1501_s23 + $0xf0] sm:$0xff] %vm469_vm1, %v802_v62 }
 0x210   : > { %1237 = shalt.err (!%p1234_p2)
}
 0x211   : > { %s1238_s9 = scalar_lea.hbm %s1568_s26, 4096  ;;  %s1242_s4 = scalar_lea.hbm %s1621_s3, 8192 }
 0x212   : > { %p1239_p4 = scmp.ne.s32.totalorder %s1568_s26, %s1238_s9  ;;  %p1243_p9 = scmp.lt.u32.totalorder %s1568_s26, %s1621_s3 }
 0x213   : > { %p1244_p1 = scmp.lt.u32.totalorder %s1242_s4, %s1238_s9  ;;  %p1246_p6 = scmp.lt.u32.totalorder %s1238_s9, %s1568_s26 }
 0x214   : > { %p1240_p5 = pnand %p1239_p4, %p1628_p11 }
 0x215   : > { %p1245_p3 = por %p1244_p1, %p1243_p9 }
 0x216   : > { %p1241_p7 = pneg %p1240_p5 }
 0x217   : > { %p1247_p12 = por %p1246_p6, %p1245_p3 }
 0x219   : > { %p1248_p13 = pnand %p1247_p12, %p1241_p7 }
 0x21b   : > { %1251 = shalt.err (!%p1248_p13)
}
 0x21c   : > { %s1296_s8 = smov 128   ;;  %s1297_s23 = smov 8  }
 0x21d   : > { %1146 = dma.vmem_to_hbm [thread:$0]  (%p1628_p11), %s1570_s19, 4096, %s1568_s26, %s821_s16, %s1296_s8, %s1296_s8, %s1297_s23  }
 0x21e PF: > { %s850_s17 = sand.u32 1, %s1278_s12   ;;  %p1629_p8 = scmp.ne.s32.totalorder %s1626_s25, 0 }
 0x21f   : > { %p1630_p10 = scmp.ge.s32.totalorder %s1290_s15, 2  ;;  %s851_s20 = scalar_lea.sflag [#allocation4], %s850_s17 }
 0x221   : > { %p1153_p0 = pnand %p1630_p10, %p1629_p8 }
 0x223   : > { %1273 = dma.done.wait (!%p1153_p0), %s851_s20, 4096  }
 0x224   : > { %1275 = vsyncadd (!%p1153_p0), %s851_s20, 4294963200  ;;  %p16_p2 = scmp.ge.s32.totalorder %s1343_s18, 4   ;;  %s1631_s12 = smov %s1282_s13 }
 0x225   : > { %s1632_s13 = smov %s1286_s14  ;;  %s1633_s14 = smov %s1355_s21 }
 0x226   : > { %s1634_s15 = smov %s1343_s18  ;;  %18 = sbr.rel (!%p16_p2) target bundleno = 5 (0x5), region = 80 }
 0x22d   :  { %856 = vsyncpa [#allocation3], 1 }
 0x22e   :  { %858 = vsyncpa [#allocation3 + $0x1], 1 }
 0x22f   :  { %859 = vsyncpa [#allocation4], 1 }
 0x230   :  { %861 = vsyncpa [#allocation4 + $0x1], 1 }

</bundles_post_ra>
